<compile_context>
chip_gen: v5e
topology: v5e:2x2
jax: 0.10.0
libtpu: 0.0.40
codegen_flags: <defaults>
</compile_context>

<pallas_src>
import functools

import jax
import jax.numpy as jnp
from jax.experimental import pallas as pl
from jax.experimental.pallas import tpu as pltpu

BN_EPS = 1e-5   # nn.BatchNorm2d default
LANE = 128      # TPU lane width; pad K and Cout to this


def _round_up(x, m):
    return (x + m - 1) // m * m


# ---------------------------------------------------------------------------
# Pass 1: conv matmul (+bias) and per-channel batch statistics.
# ---------------------------------------------------------------------------
def conv_stats_kernel(patches_ref, w_ref, b_ref, gamma_ref, beta_ref,
                      conv_ref, ss_ref, acc_ref, *, true_m, tm, need_mask):
    i = pl.program_id(0)

    @pl.when(i == 0)
    def _():
        acc_ref[...] = jnp.zeros_like(acc_ref)

    # (TM, Kp) bf16 x (Kp, Cp) bf16 -> f32 accumulation on the MXU.
    conv = jnp.dot(patches_ref[...], w_ref[...],
                   preferred_element_type=jnp.float32) + b_ref[...]
    # Store intermediate as bf16: halves the HBM write (here) + read (pass 2).
    conv_ref[...] = conv.astype(conv_ref.dtype)

    # Only mask padded rows out of the batch statistics if padding exists
    # (static check -> no VALU cost in the common, divisible case).
    if need_mask:
        row = i * tm + jax.lax.broadcasted_iota(jnp.int32, conv.shape, 0)
        masked = conv * (row < true_m).astype(jnp.float32)
    else:
        masked = conv
    acc_ref[0:1, :] += jnp.sum(masked, axis=0, keepdims=True)          # sum
    acc_ref[1:2, :] += jnp.sum(masked * conv, axis=0, keepdims=True)   # sum of squares

    @pl.when(i == pl.num_programs(0) - 1)
    def _():
        inv_m = jnp.float32(1.0 / true_m)
        mean = acc_ref[0:1, :] * inv_m
        # clamp avoids tiny negative variance from f32 cancellation
        var = jnp.maximum(acc_ref[1:2, :] * inv_m - mean * mean, 0.0)
        scale = gamma_ref[...] * jax.lax.rsqrt(var + BN_EPS)
        shift = beta_ref[...] - mean * scale
        ss_ref[0:1, :] = scale
        ss_ref[1:2, :] = shift


# ---------------------------------------------------------------------------
# Pass 2: apply BN affine (precomputed scale/shift) + ReLU.
# ---------------------------------------------------------------------------
def bn_relu_kernel(conv_ref, ss_ref, o_ref):
    y = conv_ref[...].astype(jnp.float32) * ss_ref[0:1, :] + ss_ref[1:2, :]
    o_ref[...] = jnp.maximum(y, 0.0).astype(o_ref.dtype)


def conv2d_bn_relu(x_nchw, weight, bias, gamma, beta, *, tm=512):
    """x_nchw: (N, Cin, H, W); weight: (Cout, Cin, 3, 3); bias/gamma/beta: (Cout,)."""
    N, Cin, H, W = x_nchw.shape
    Cout = weight.shape[0]
    M = N * H * W
    K = 9 * Cin
    K_pad = _round_up(K, LANE)
    C_pad = _round_up(Cout, LANE)
    tm = min(tm, _round_up(M, LANE))           # don't over-pad tiny problems
    M_pad = _round_up(M, tm)
    n_tiles = M_pad // tm
    need_mask = (M_pad != M)

    # --- glue (plain JAX): layout change, pad=1, im2col patch construction ---
    # TODO(synk): replace materialized im2col with 9 shifted (TM,Cin)x(Cin,Cout)
    # matmuls over NHWC halo tiles to cut activation HBM traffic ~9x.
    x = jnp.transpose(x_nchw, (0, 2, 3, 1))                      # NHWC
    xp = jnp.pad(x, ((0, 0), (1, 1), (1, 1), (0, 0)))            # padding=1
    taps = [xp[:, kh:kh + H, kw:kw + W, :]
            for kh in range(3) for kw in range(3)]
    patches = jnp.concatenate(taps, axis=-1).reshape(M, K)
    # pad M (rows) and K (cols) with zeros, cast to bf16 for MXU-native matmul
    patches = jnp.pad(patches, ((0, M_pad - M), (0, K_pad - K))).astype(jnp.bfloat16)

    # weight (Cout, Cin, kh, kw) -> (kh, kw, Cin, Cout) -> (K, Cout) -> pad -> bf16
    w = jnp.transpose(weight, (2, 3, 1, 0)).reshape(K, Cout)
    w = jnp.pad(w, ((0, K_pad - K), (0, C_pad - Cout))).astype(jnp.bfloat16)

    b_p = jnp.pad(bias.astype(jnp.float32), (0, C_pad - Cout)).reshape(1, C_pad)
    g_p = jnp.pad(gamma.astype(jnp.float32), (0, C_pad - Cout)).reshape(1, C_pad)
    be_p = jnp.pad(beta.astype(jnp.float32), (0, C_pad - Cout)).reshape(1, C_pad)

    vmem_limit = 48 * 1024 * 1024  # fits v7x's 64 MiB/TC and well under v5e/v6e

    # --- pass 1: tiled conv matmul + batch-stat accumulation ---------------
    conv_out, scale_shift = pl.pallas_call(
        functools.partial(conv_stats_kernel, true_m=M, tm=tm, need_mask=need_mask),
        out_shape=(
            jax.ShapeDtypeStruct((M_pad, C_pad), jnp.bfloat16),   # bf16 intermediate
            jax.ShapeDtypeStruct((2, C_pad), jnp.float32),
        ),
        grid_spec=pltpu.PrefetchScalarGridSpec(
            num_scalar_prefetch=0,
            grid=(n_tiles,),
            in_specs=[
                pl.BlockSpec((tm, K_pad), lambda i: (i, 0)),        # patches tile
                pl.BlockSpec((K_pad, C_pad), lambda i: (0, 0)),     # weights (resident)
                pl.BlockSpec((1, C_pad), lambda i: (0, 0)),         # bias
                pl.BlockSpec((1, C_pad), lambda i: (0, 0)),         # gamma
                pl.BlockSpec((1, C_pad), lambda i: (0, 0)),         # beta
            ],
            out_specs=[
                pl.BlockSpec((tm, C_pad), lambda i: (i, 0)),        # conv output tile
                pl.BlockSpec((2, C_pad), lambda i: (0, 0)),         # scale/shift (resident)
            ],
            scratch_shapes=[pltpu.VMEM((2, C_pad), jnp.float32)],   # sum / sumsq acc
        ),
        compiler_params=pltpu.CompilerParams(
            dimension_semantics=("arbitrary",),   # stats accumulate across M tiles
            vmem_limit_bytes=vmem_limit,
        ),
    )(patches, w, b_p, g_p, be_p)

    # --- pass 2: elementwise normalize + ReLU (parallel over M tiles) ------
    out_flat = pl.pallas_call(
        bn_relu_kernel,
        out_shape=jax.ShapeDtypeStruct((M_pad, C_pad), jnp.float32),
        grid_spec=pltpu.PrefetchScalarGridSpec(
            num_scalar_prefetch=0,
            grid=(n_tiles,),
            in_specs=[
                pl.BlockSpec((tm, C_pad), lambda i: (i, 0)),
                pl.BlockSpec((2, C_pad), lambda i: (0, 0)),
            ],
            out_specs=pl.BlockSpec((tm, C_pad), lambda i: (i, 0)),
        ),
        compiler_params=pltpu.CompilerParams(
            dimension_semantics=("parallel",),
            vmem_limit_bytes=vmem_limit,
        ),
    )(conv_out, scale_shift)

    # slice off padding, back to NCHW
    out = out_flat[:M, :Cout].reshape(N, H, W, Cout)
    return jnp.transpose(out, (0, 3, 1, 2))


def _reference(x_nchw, weight, bias, gamma, beta):
    """Pure-JAX reference of the same forward (for a sanity check)."""
    y = jax.lax.conv_general_dilated(
        x_nchw, weight, window_strides=(1, 1), padding=((1, 1), (1, 1)),
        dimension_numbers=("NCHW", "OIHW", "NCHW"))
    y = y + bias.reshape(1, -1, 1, 1)
    mean = jnp.mean(y, axis=(0, 2, 3), keepdims=True)
    var = jnp.mean((y - mean) ** 2, axis=(0, 2, 3), keepdims=True)
    y = (y - mean) * jax.lax.rsqrt(var + BN_EPS)
    y = y * gamma.reshape(1, -1, 1, 1) + beta.reshape(1, -1, 1, 1)
    return jnp.maximum(y, 0.0)


if __name__ == "__main__":
    key = jax.random.PRNGKey(0)
    kx, kw, kb = jax.random.split(key, 3)

    N, Cin, H, W = 2, 4, 16, 16
    Cout = 8

    x = jax.random.normal(kx, (N, Cin, H, W), dtype=jnp.float32)
    weight = 0.1 * jax.random.normal(kw, (Cout, Cin, 3, 3), dtype=jnp.float32)
    bias = 0.1 * jax.random.normal(kb, (Cout,), dtype=jnp.float32)
    gamma = jnp.ones((Cout,), dtype=jnp.float32)   # nn.BatchNorm2d default init
    beta = jnp.zeros((Cout,), dtype=jnp.float32)   # nn.BatchNorm2d default init

    out = conv2d_bn_relu(x, weight, bias, gamma, beta)
    out = jax.block_until_ready(out)

    ref = _reference(x, weight, bias, gamma, beta)
    assert out.shape == (N, Cout, H, W), out.shape
    # bf16 matmul inputs / bf16 intermediate with f32 stats -> looser tolerance
    assert jnp.allclose(out, ref, atol=2e-2, rtol=2e-2), float(
        jnp.max(jnp.abs(out - ref)))

    print("KERNEL_OK")
</pallas_src>

<mosaic_0001>
module attributes {stable_mosaic.version = 11 : i64} {
  func.func @conv_stats_kernel(%arg0: i32, %arg1: memref<512x128xbf16, #tpu.memory_space<vmem>>, %arg2: memref<128x128xbf16, #tpu.memory_space<vmem>>, %arg3: memref<1x128xf32, #tpu.memory_space<vmem>>, %arg4: memref<1x128xf32, #tpu.memory_space<vmem>>, %arg5: memref<1x128xf32, #tpu.memory_space<vmem>>, %arg6: memref<512x128xbf16, #tpu.memory_space<vmem>>, %arg7: memref<2x128xf32, #tpu.memory_space<vmem>>, %arg8: memref<2x128xf32, #tpu.memory_space<vmem>>) attributes {dimension_semantics = [#tpu.dimension_semantics<arbitrary>], iteration_bounds = array<i64: 1>, scalar_prefetch = 0 : i64, scratch_operands = 1 : i64, tpu.core_type = #tpu.core_type<tc>, window_params = [{transform_indices = @transform_0, window_bounds = array<i64: 512, 128>}, {pipeline_mode = #tpu.pipeline_mode<synchronous>, transform_indices = @transform_1, window_bounds = array<i64: 128, 128>}, {pipeline_mode = #tpu.pipeline_mode<synchronous>, transform_indices = @transform_2, window_bounds = array<i64: 1, 128>}, {pipeline_mode = #tpu.pipeline_mode<synchronous>, transform_indices = @transform_3, window_bounds = array<i64: 1, 128>}, {pipeline_mode = #tpu.pipeline_mode<synchronous>, transform_indices = @transform_4, window_bounds = array<i64: 1, 128>}, {transform_indices = @transform_5, window_bounds = array<i64: 512, 128>}, {pipeline_mode = #tpu.pipeline_mode<synchronous>, transform_indices = @transform_6, window_bounds = array<i64: 2, 128>}]} {
    %c0_i32 = arith.constant 0 : i32
    %0 = arith.cmpi eq, %arg0, %c0_i32 : i32
    %1 = arith.extui %0 : i1 to i32
    %c0_i32_0 = arith.constant 0 : i32
    %2 = arith.cmpi ne, %1, %c0_i32_0 : i32
    scf.if %2 {
      %cst_19 = arith.constant 0.000000e+00 : f32
      %25 = vector.broadcast %cst_19 : f32 to vector<2x128xf32>
      %c0_20 = arith.constant 0 : index
      %c0_21 = arith.constant 0 : index
      %26 = vector.load %arg8[%c0_20, %c0_21] : memref<2x128xf32, #tpu.memory_space<vmem>>, vector<2x128xf32>
      tpu.vector_store %arg8[%c0_20, %c0_21], %25 {strides = array<i32>} : memref<2x128xf32, #tpu.memory_space<vmem>>, vector<2x128xf32>,
    } else {
    }
    %c0 = arith.constant 0 : index
    %c0_1 = arith.constant 0 : index
    %3 = vector.load %arg1[%c0, %c0_1] : memref<512x128xbf16, #tpu.memory_space<vmem>>, vector<512x128xbf16>
    %c0_2 = arith.constant 0 : index
    %c0_3 = arith.constant 0 : index
    %4 = vector.load %arg2[%c0_2, %c0_3] : memref<128x128xbf16, #tpu.memory_space<vmem>>, vector<128x128xbf16>
    %cst = arith.constant dense<0.000000e+00> : vector<512x128xf32>
    %5 = tpu.matmul %3, %4, %cst {dimension_numbers = #tpu.dot_dimension_numbers<[1], [0], [0], [1], [0, 0, 1, 1], [], []>} : vector<512x128xbf16>, vector<128x128xbf16>, vector<512x128xf32> -> vector<512x128xf32>
    %c0_4 = arith.constant 0 : index
    %c0_5 = arith.constant 0 : index
    %6 = vector.load %arg3[%c0_4, %c0_5] : memref<1x128xf32, #tpu.memory_space<vmem>>, vector<1x128xf32>
    %7 = vector.broadcast %6 : vector<1x128xf32> to vector<512x128xf32>
    %8 = arith.addf %5, %7 : vector<512x128xf32>
    %9 = arith.truncf %8 : vector<512x128xf32> to vector<512x128xbf16>
    %c0_6 = arith.constant 0 : index
    %c0_7 = arith.constant 0 : index
    %10 = vector.load %arg6[%c0_6, %c0_7] : memref<512x128xbf16, #tpu.memory_space<vmem>>, vector<512x128xbf16>
    tpu.vector_store %arg6[%c0_6, %c0_7], %9 {strides = array<i32>} : memref<512x128xbf16, #tpu.memory_space<vmem>>, vector<512x128xbf16>,
    %c0_8 = arith.constant 0 : index
    %c0_9 = arith.constant 0 : index
    %11 = vector.load %arg8[%c0_8, %c0_9] : memref<2x128xf32, #tpu.memory_space<vmem>>, vector<1x128xf32>
    %cst_10 = arith.constant dense<0.000000e+00> : vector<128xf32>
    %12 = vector.multi_reduction <add>, %8, %cst_10 [0] : vector<512x128xf32> to vector<128xf32>
    %13 = vector.shape_cast %12 : vector<128xf32> to vector<1x128xf32>
    %14 = arith.addf %11, %13 : vector<1x128xf32>
    %c0_11 = arith.constant 0 : index
    %c0_12 = arith.constant 0 : index
    %15 = vector.load %arg8[%c0_11, %c0_12] : memref<2x128xf32, #tpu.memory_space<vmem>>, vector<1x128xf32>
    tpu.vector_store %arg8[%c0_11, %c0_12], %14 {strides = array<i32>} : memref<2x128xf32, #tpu.memory_space<vmem>>, vector<1x128xf32>,
    %c1 = arith.constant 1 : index
    %c0_13 = arith.constant 0 : index
    %16 = vector.load %arg8[%c1, %c0_13] : memref<2x128xf32, #tpu.memory_space<vmem>>, vector<1x128xf32>
    %17 = arith.mulf %8, %8 : vector<512x128xf32>
    %cst_14 = arith.constant dense<0.000000e+00> : vector<128xf32>
    %18 = vector.multi_reduction <add>, %17, %cst_14 [0] : vector<512x128xf32> to vector<128xf32>
    %19 = vector.shape_cast %18 : vector<128xf32> to vector<1x128xf32>
    %20 = arith.addf %16, %19 : vector<1x128xf32>
    %c1_15 = arith.constant 1 : index
    %c0_16 = arith.constant 0 : index
    %21 = vector.load %arg8[%c1_15, %c0_16] : memref<2x128xf32, #tpu.memory_space<vmem>>, vector<1x128xf32>
    tpu.vector_store %arg8[%c1_15, %c0_16], %20 {strides = array<i32>} : memref<2x128xf32, #tpu.memory_space<vmem>>, vector<1x128xf32>,
    %c0_i32_17 = arith.constant 0 : i32
    %22 = arith.cmpi eq, %arg0, %c0_i32_17 : i32
    %23 = arith.extui %22 : i1 to i32
    %c0_i32_18 = arith.constant 0 : i32
    %24 = arith.cmpi ne, %23, %c0_i32_18 : i32
    scf.if %24 {
      %c0_19 = arith.constant 0 : index
      %c0_20 = arith.constant 0 : index
      %25 = vector.load %arg8[%c0_19, %c0_20] : memref<2x128xf32, #tpu.memory_space<vmem>>, vector<1x128xf32>
      %cst_21 = arith.constant 0.001953125 : f32
      %26 = vector.broadcast %cst_21 : f32 to vector<1x128xf32>
      %27 = arith.mulf %25, %26 : vector<1x128xf32>
      %c1_22 = arith.constant 1 : index
      %c0_23 = arith.constant 0 : index
      %28 = vector.load %arg8[%c1_22, %c0_23] : memref<2x128xf32, #tpu.memory_space<vmem>>, vector<1x128xf32>
      %cst_24 = arith.constant 0.001953125 : f32
      %29 = vector.broadcast %cst_24 : f32 to vector<1x128xf32>
      %30 = arith.mulf %28, %29 : vector<1x128xf32>
      %31 = arith.mulf %27, %27 : vector<1x128xf32>
      %32 = arith.subf %30, %31 : vector<1x128xf32>
      %cst_25 = arith.constant 0.000000e+00 : f32
      %33 = vector.broadcast %cst_25 : f32 to vector<1x128xf32>
      %34 = arith.maximumf %32, %33 : vector<1x128xf32>
      %c0_26 = arith.constant 0 : index
      %c0_27 = arith.constant 0 : index
      %35 = vector.load %arg4[%c0_26, %c0_27] : memref<1x128xf32, #tpu.memory_space<vmem>>, vector<1x128xf32>
      %cst_28 = arith.constant 9.99999974E-6 : f32
      %36 = vector.broadcast %cst_28 : f32 to vector<1x128xf32>
      %37 = arith.addf %34, %36 : vector<1x128xf32>
      %38 = math.rsqrt %37 : vector<1x128xf32>
      %39 = arith.mulf %35, %38 : vector<1x128xf32>
      %c0_29 = arith.constant 0 : index
      %c0_30 = arith.constant 0 : index
      %40 = vector.load %arg5[%c0_29, %c0_30] : memref<1x128xf32, #tpu.memory_space<vmem>>, vector<1x128xf32>
      %41 = arith.mulf %27, %39 : vector<1x128xf32>
      %42 = arith.subf %40, %41 : vector<1x128xf32>
      %c0_31 = arith.constant 0 : index
      %c0_32 = arith.constant 0 : index
      %43 = vector.load %arg7[%c0_31, %c0_32] : memref<2x128xf32, #tpu.memory_space<vmem>>, vector<1x128xf32>
      tpu.vector_store %arg7[%c0_31, %c0_32], %39 {strides = array<i32>} : memref<2x128xf32, #tpu.memory_space<vmem>>, vector<1x128xf32>,
      %c1_33 = arith.constant 1 : index
      %c0_34 = arith.constant 0 : index
      %44 = vector.load %arg7[%c1_33, %c0_34] : memref<2x128xf32, #tpu.memory_space<vmem>>, vector<1x128xf32>
      tpu.vector_store %arg7[%c1_33, %c0_34], %42 {strides = array<i32>} : memref<2x128xf32, #tpu.memory_space<vmem>>, vector<1x128xf32>,
    } else {
    }
    return
  }
  func.func @transform_0(%arg0: i32) -> (i32, i32) {
    %c0_i32 = arith.constant 0 : i32
    %c0_i32_0 = arith.constant 0 : i32
    return %arg0, %c0_i32 : i32, i32
  }
  func.func @transform_1(%arg0: i32) -> (i32, i32) {
    %c0_i32 = arith.constant 0 : i32
    %c0_i32_0 = arith.constant 0 : i32
    %c0_i32_1 = arith.constant 0 : i32
    return %c0_i32, %c0_i32_0 : i32, i32
  }
  func.func @transform_2(%arg0: i32) -> (i32, i32) {
    %c0_i32 = arith.constant 0 : i32
    %c0_i32_0 = arith.constant 0 : i32
    %c0_i32_1 = arith.constant 0 : i32
    return %c0_i32, %c0_i32_0 : i32, i32
  }
  func.func @transform_3(%arg0: i32) -> (i32, i32) {
    %c0_i32 = arith.constant 0 : i32
    %c0_i32_0 = arith.constant 0 : i32
    %c0_i32_1 = arith.constant 0 : i32
    return %c0_i32, %c0_i32_0 : i32, i32
  }
  func.func @transform_4(%arg0: i32) -> (i32, i32) {
    %c0_i32 = arith.constant 0 : i32
    %c0_i32_0 = arith.constant 0 : i32
    %c0_i32_1 = arith.constant 0 : i32
    return %c0_i32, %c0_i32_0 : i32, i32
  }
  func.func @transform_5(%arg0: i32) -> (i32, i32) {
    %c0_i32 = arith.constant 0 : i32
    %c0_i32_0 = arith.constant 0 : i32
    return %arg0, %c0_i32 : i32, i32
  }
  func.func @transform_6(%arg0: i32) -> (i32, i32) {
    %c0_i32 = arith.constant 0 : i32
    %c0_i32_0 = arith.constant 0 : i32
    %c0_i32_1 = arith.constant 0 : i32
    return %c0_i32, %c0_i32_0 : i32, i32
  }
}

</mosaic_0001>

<bundles_post_ra>
// kernel: tpu_custom_call.1
= control target key start
LH: loop header
LB: loop body
LE: loop exit
PB: predicated region body
PF: predicated region fallthrough
CT: control target
= control target key end

     0   :  { %12 = vsyncpa [#allocation4], 0  ;;  %s1957_s0 = inlined_call_operand.hbm [shape: bf16[512,128], index: 0, kind: input, shape index: {}]   ;;  %s1958_s1 = inlined_call_operand.hbm [shape: bf16[128,128], index: 1, kind: input, shape index: {}]   ;;  %s1959_s2 = inlined_call_operand.vmem [shape: f32[1,128], index: 2, kind: input, shape index: {}]   ;;  %s1960_s3 = inlined_call_operand.vmem [shape: f32[1,128], index: 3, kind: input, shape index: {}]   ;;  %s1961_s4 = inlined_call_operand.vmem [shape: f32[1,128], index: 4, kind: input, shape index: {}]   ;;  %s1962_s5 = inlined_call_operand.hbm [shape: bf16[512,128], index: 5, kind: output, shape index: {0}]   ;;  %s1963_s6 = inlined_call_operand.hbm [shape: f32[2,128], index: 6, kind: output, shape index: {1}]  }
   0x1   :  { %13 = vsyncpa [#allocation7], 0 }
   0x2   :  { %14 = vsyncpa [#allocation5], 0 }
   0x3   :  { %15 = vsyncpa [#allocation10], 0  ;;  %s20_s23 = sshll.u32 %s1957_s0, 4  ;;  %s1483_s24 = smov [#allocation3]   ;;  %s21_s23 = int_to_ptr.hbm [resolvable:$true] %s20_s23 }
   0x4   :  { %s22_s25 = sshll.u32 %s1483_s24, 4  ;;  %s33_s28 = sshll.u32 %s1958_s1, 4  ;;  %s23_s25 = int_to_ptr.vmem [resolvable:$true] %s22_s25  ;;  %s34_s28 = int_to_ptr.hbm [resolvable:$true] %s33_s28 }
   0x5   :  { %s1484_s29 = smov 64   ;;  %s1485_s30 = smov 4  }
   0x6   :  { %28 = dma.hbm_to_vmem [thread:$0]  %s21_s23, 4096, %s23_s25, [#allocation4], %s1484_s29, %s1484_s29, %s1485_s30  }
   0x7   :  { %s1486_s7 = smov [#allocation6]  }
   0x8   :  { %s35_s8 = sshll.u32 %s1486_s7, 4  ;;  %s36_s8 = int_to_ptr.vmem [resolvable:$true] %s35_s8 }
   0x9   :  { %41 = dma.hbm_to_vmem [thread:$0]  %s34_s28, 1024, %s36_s8, [#allocation7], %s1484_s29, %s1484_s29, %s1485_s30  }
   0xa   :  { %1475 = dma.done.wait [#allocation4], 4096  }
   0xb   :  { %1476 = vsyncadd [#allocation4], 4294963200 }
   0xc   :  { %1477 = dma.done.wait [#allocation7], 1024  }
   0xd   :  { %1478 = vsyncadd [#allocation7], 4294966272  ;;  %v1153_v0 = vld [vmem:[#allocation6 + $0x38] sm:$0xff]  ;;  %v1152_v1 = vld [vmem:[#allocation6 + $0x30] sm:$0xff]  ;;  %s924_s12 = sshll.u32 %s1962_s5, 4  ;;  %s1489_s16 = smov [#allocation9]   ;;  %s925_s12 = int_to_ptr.hbm [resolvable:$true] %s924_s12 }
   0xe   :  { %385 = vmatpush.bf16.msra.mxu0 %v1153_v0  ;;  %1345 = vmatpush.bf16.msra.mxu1 %v1153_v0  ;;  %v1151_v2 = vld [vmem:[#allocation6 + $0x28] sm:$0xff]  ;;  %v1150_v3 = vld [vmem:[#allocation6 + $0x20] sm:$0xff]  ;;  %v1149_v4 = vld [vmem:[#allocation6 + $0x18] sm:$0xff]  ;;  %s936_s17 = sshll.u32 %s1489_s16, 4  ;;  %s938_s20 = sshll.u32 %s1963_s6, 4  ;;  %s937_s17 = int_to_ptr.vmem [resolvable:$true] %s936_s17  ;;  %s939_s20 = int_to_ptr.hbm [resolvable:$true] %s938_s20 }
   0xf   :  { %1346 = vmatpush.bf16.msra.mxu2 %v1153_v0  ;;  %1347 = vmatpush.bf16.msra.mxu3 %v1153_v0  ;;  %v1148_v5 = vld [vmem:[#allocation6 + $0x10] sm:$0xff]  ;;  %v1147_v6 = vld [vmem:[#allocation6 + $0x8] sm:$0xff]  ;;  %v1146_v7 = vld [vmem:[#allocation6] sm:$0xff] }
  0x10   :  { %v1114_v8 = vld [vmem:[#allocation3] sm:$0xff]  ;;  %v1115_v10 = vld [vmem:[#allocation3 + $0x8] sm:$0xff]  ;;  %v1116_v13 = vld [vmem:[#allocation3 + $0x10] sm:$0xff] }
  0x11   :  { %v1122_v9 = vld [vmem:[#allocation3 + $0x40] sm:$0xff]  ;;  %v1123_v11 = vld [vmem:[#allocation3 + $0x48] sm:$0xff]  ;;  %v1124_v14 = vld [vmem:[#allocation3 + $0x50] sm:$0xff] }
  0x12   :  { %386 = vmatpush.bf16.msra.mxu0 %v1152_v1  ;;  %1348 = vmatpush.bf16.msra.mxu1 %v1152_v1  ;;  %v1130_v12 = vld [vmem:[#allocation3 + $0x80] sm:$0xff]  ;;  %v1131_v15 = vld [vmem:[#allocation3 + $0x88] sm:$0xff]  ;;  %v1117_v16 = vld [vmem:[#allocation3 + $0x18] sm:$0xff] }
  0x13   :  { %1349 = vmatpush.bf16.msra.mxu2 %v1152_v1  ;;  %1350 = vmatpush.bf16.msra.mxu3 %v1152_v1  ;;  %v1125_v17 = vld [vmem:[#allocation3 + $0x58] sm:$0xff]  ;;  %v1132_v18 = vld [vmem:[#allocation3 + $0x90] sm:$0xff]  ;;  %v1138_v19 = vld [vmem:[#allocation3 + $0xc0] sm:$0xff] }
  0x14   :  { %v1118_v20 = vld [vmem:[#allocation3 + $0x20] sm:$0xff]  ;;  %v1133_v22 = vld [vmem:[#allocation3 + $0x98] sm:$0xff]  ;;  %v1139_v23 = vld [vmem:[#allocation3 + $0xc8] sm:$0xff] }
  0x15   :  { %v1126_v21 = vld [vmem:[#allocation3 + $0x60] sm:$0xff]  ;;  %v1119_v24 = vld [vmem:[#allocation3 + $0x28] sm:$0xff]  ;;  %v1140_v27 = vld [vmem:[#allocation3 + $0xd0] sm:$0xff] }
  0x16   :  { %387 = vmatpush.bf16.msra.mxu0 %v1151_v2  ;;  %1351 = vmatpush.bf16.msra.mxu1 %v1151_v2  ;;  %v1127_v25 = vld [vmem:[#allocation3 + $0x68] sm:$0xff]  ;;  %v1134_v26 = vld [vmem:[#allocation3 + $0xa0] sm:$0xff]  ;;  %v1120_v28 = vld [vmem:[#allocation3 + $0x30] sm:$0xff] }
  0x17   :  { %1352 = vmatpush.bf16.msra.mxu2 %v1151_v2  ;;  %1353 = vmatpush.bf16.msra.mxu3 %v1151_v2  ;;  %v1128_v29 = vld [vmem:[#allocation3 + $0x70] sm:$0xff]  ;;  %v1135_v30 = vld [vmem:[#allocation3 + $0xa8] sm:$0xff]  ;;  %v1141_v31 = vld [vmem:[#allocation3 + $0xd8] sm:$0xff] }
  0x18   :  { %v1121_v32 = vld [vmem:[#allocation3 + $0x38] sm:$0xff]  ;;  %v1136_v34 = vld [vmem:[#allocation3 + $0xb0] sm:$0xff]  ;;  %v1142_v35 = vld [vmem:[#allocation3 + $0xe0] sm:$0xff] }
  0x19   :  { %v1129_v33 = vld [vmem:[#allocation3 + $0x78] sm:$0xff]  ;;  %v1143_v40 = vld [vmem:[#allocation3 + $0xe8] sm:$0xff]  ;;  %v1144_v58 = vld [vmem:[#allocation3 + $0xf0] sm:$0xff] }
  0x1a   :  { %388 = vmatpush.bf16.msra.mxu0 %v1150_v3  ;;  %1354 = vmatpush.bf16.msra.mxu1 %v1150_v3  ;;  %v1540_v38 = vld [vmem:[%s1959_s2] ss:$0 sm:$0xff]  ;;  %s1487_s2 = smov [#allocation8]  }
  0x1b   :  { %1355 = vmatpush.bf16.msra.mxu2 %v1150_v3  ;;  %1356 = vmatpush.bf16.msra.mxu3 %v1150_v3  ;;  %v1137_v39 = vld [vmem:[#allocation3 + $0xb8] sm:$0xff]  ;;  %s922_s9 = sshll.u32 %s1487_s2, 4  ;;  %s923_s9 = int_to_ptr.vmem [resolvable:$true] %s922_s9 }
  0x1e   :  { %389 = vmatpush.bf16.msra.mxu0 %v1149_v4  ;;  %1357 = vmatpush.bf16.msra.mxu1 %v1149_v4 }
  0x1f   :  { %1358 = vmatpush.bf16.msra.mxu2 %v1149_v4  ;;  %1359 = vmatpush.bf16.msra.mxu3 %v1149_v4 }
  0x22   :  { %390 = vmatpush.bf16.msra.mxu0 %v1148_v5  ;;  %1360 = vmatpush.bf16.msra.mxu1 %v1148_v5 }
  0x23   :  { %1361 = vmatpush.bf16.msra.mxu2 %v1148_v5  ;;  %1362 = vmatpush.bf16.msra.mxu3 %v1148_v5 }
  0x26   :  { %391 = vmatpush.bf16.msra.mxu0 %v1147_v6  ;;  %1363 = vmatpush.bf16.msra.mxu1 %v1147_v6 }
  0x27   :  { %1364 = vmatpush.bf16.msra.mxu2 %v1147_v6  ;;  %1365 = vmatpush.bf16.msra.mxu3 %v1147_v6 }
  0x2a   :  { %392 = vmatpush.bf16.msra.mxu0 %v1146_v7  ;;  %1366 = vmatpush.bf16.msra.mxu1 %v1146_v7 }
  0x2b   :  { %1367 = vmatpush.bf16.msra.mxu2 %v1146_v7  ;;  %1368 = vmatpush.bf16.msra.mxu3 %v1146_v7 }
  0x2d   :  { %393 = vmatmul.bf16.vlgmr.msra.gmra.mxu0 %v1114_v8  ;;  %433 = vmatmul.bf16.vlgmr.msra.gmra.mxu1 %v1122_v9 }
  0x2e   :  { %473 = vmatmul.bf16.vlgmr.msra.gmra.mxu2 %v1130_v12  ;;  %513 = vmatmul.bf16.vlgmr.msra.gmra.mxu3 %v1138_v19  ;;  %v1145_v12 = vld [vmem:[#allocation3 + $0xf8] sm:$0xff] }
  0x3d   :  { %398 = vmatmul.bf16.gmra.mxu0 %v1115_v10  ;;  %438 = vmatmul.bf16.gmra.mxu1 %v1123_v11 }
  0x3e   :  { %478 = vmatmul.bf16.gmra.mxu2 %v1131_v15  ;;  %518 = vmatmul.bf16.gmra.mxu3 %v1139_v23 }
  0x4d   :  { %403 = vmatmul.bf16.gmra.mxu0 %v1116_v13  ;;  %443 = vmatmul.bf16.gmra.mxu1 %v1124_v14 }
  0x4e   :  { %483 = vmatmul.bf16.gmra.mxu2 %v1132_v18  ;;  %523 = vmatmul.bf16.gmra.mxu3 %v1140_v27 }
  0x5d   :  { %408 = vmatmul.bf16.gmra.mxu0 %v1117_v16  ;;  %448 = vmatmul.bf16.gmra.mxu1 %v1125_v17 }
  0x5e   :  { %488 = vmatmul.bf16.gmra.mxu2 %v1133_v22  ;;  %528 = vmatmul.bf16.gmra.mxu3 %v1141_v31 }
  0x6d   :  { %413 = vmatmul.bf16.gmra.mxu0 %v1118_v20  ;;  %453 = vmatmul.bf16.gmra.mxu1 %v1126_v21 }
  0x6e   :  { %493 = vmatmul.bf16.gmra.mxu2 %v1134_v26  ;;  %533 = vmatmul.bf16.gmra.mxu3 %v1142_v35 }
  0x7d   :  { %418 = vmatmul.bf16.gmra.mxu0 %v1119_v24  ;;  %458 = vmatmul.bf16.gmra.mxu1 %v1127_v25 }
  0x7e   :  { %498 = vmatmul.bf16.gmra.mxu2 %v1135_v30  ;;  %538 = vmatmul.bf16.gmra.mxu3 %v1143_v40 }
  0x8d   :  { %423 = vmatmul.bf16.gmra.mxu0 %v1120_v28  ;;  %463 = vmatmul.bf16.gmra.mxu1 %v1128_v29 }
  0x8e   :  { %503 = vmatmul.bf16.gmra.mxu2 %v1136_v34  ;;  %543 = vmatmul.bf16.gmra.mxu3 %v1144_v58 }
  0x9d   :  { %428 = vmatmul.bf16.gmra.mxu0 %v1121_v32  ;;  %468 = vmatmul.bf16.gmra.mxu1 %v1129_v33 }
  0x9e   :  { %508 = vmatmul.bf16.gmra.mxu2 %v1137_v39  ;;  %548 = vmatmul.bf16.gmra.mxu3 %v1145_v12 }
  0xaa   :  { %v394_v36 = vpop.f32.mrf.mxu0  ;;  %v434_v37 = vpop.f32.mrf.mxu1 }
  0xab   :  { %v395_v41 = vadd.f32 %v1540_v38, %v394_v36  ;;  %v1544_v42 = vadd.f32 %v1540_v38, %v434_v37 }
  0xad   :  { %v755_v47 = vmul.f32 %v395_v41, %v395_v41 }
  0xb1   :  { %v474_v1 = vpop.f32.mrf.mxu2  ;;  %v514_v36 = vpop.f32.mrf.mxu3 }
  0xb2   :  { %v396_v43 = vpop.f32.mrf.mxu0  ;;  %v436_v44 = vpop.f32.mrf.mxu1  ;;  %v1567_v9 = vadd.f32 %v1540_v38, %v474_v1 }
  0xb3   :  { %v397_v45 = vadd.f32 %v1540_v38, %v396_v43  ;;  %v1548_v46 = vadd.f32 %v1540_v38, %v436_v44  ;;  %v1618_v44 = vadd.f32 %v1540_v38, %v514_v36 }
  0xb5   :  { %v1157_v48 = vpack.c.bf16 %v397_v45, %v395_v41  ;;  %v683_v49 = vadd.f32 %v397_v45, %v395_v41  ;;  %v756_v50 = vmul.f32 %v397_v45, %v397_v45  ;;  %v1197_v51 = vpack.c.bf16 %v1548_v46, %v1544_v42 }
  0xb7   :  { %1158 = vst [vmem:[#allocation8] sm:$0xff] %v1157_v48   ;;  %v819_v52 = vadd.f32 %v756_v50, %v755_v47 }
  0xb8   :  { %1321 = vst [vmem:[#allocation8 + $0x40] sm:$0xff] %v1197_v51  }
  0xb9   :  { %v476_v10 = vpop.f32.mrf.mxu2  ;;  %v516_v47 = vpop.f32.mrf.mxu3 }
  0xba   :  { %v399_v53 = vpop.f32.mrf.mxu0  ;;  %v439_v54 = vpop.f32.mrf.mxu1  ;;  %v1570_v11 = vadd.f32 %v1540_v38, %v476_v10 }
  0xbb   :  { %v400_v55 = vadd.f32 %v1540_v38, %v399_v53  ;;  %v1554_v60 = vadd.f32 %v1540_v38, %v439_v54 }
  0xbc   :  { %v1237_v13 = vpack.c.bf16 %v1570_v11, %v1567_v9 }
  0xbd   :  { %v684_v56 = vadd.f32 %v683_v49, %v400_v55  ;;  %v757_v57 = vmul.f32 %v400_v55, %v400_v55  ;;  %v1624_v49 = vadd.f32 %v1540_v38, %v516_v47 }
  0xbe   :  { %1329 = vst [vmem:[#allocation8 + $0x80] sm:$0xff] %v1237_v13  }
  0xbf   :  { %v820_v59 = vadd.f32 %v819_v52, %v757_v57  ;;  %v1277_v51 = vpack.c.bf16 %v1624_v49, %v1618_v44 }
  0xc1   :  { %v479_v20 = vpop.f32.mrf.mxu2  ;;  %1337 = vst [vmem:[#allocation8 + $0xc0] sm:$0xff] %v1277_v51  }
  0xc2   :  { %v401_v61 = vpop.f32.mrf.mxu0  ;;  %v441_v62 = vpop.f32.mrf.mxu1  ;;  %v1591_v25 = vadd.f32 %v1540_v38, %v479_v20 }
  0xc3   :  { %v402_v63 = vadd.f32 %v1540_v38, %v401_v61  ;;  %v1558_v0 = vadd.f32 %v1540_v38, %v441_v62 }
  0xc5   :  { %v1162_v2 = vpack.c.bf16 %v402_v63, %v400_v55  ;;  %v1560_v3 = vadd.f32 %v684_v56, %v402_v63  ;;  %v758_v4 = vmul.f32 %v402_v63, %v402_v63  ;;  %v1202_v5 = vpack.c.bf16 %v1558_v0, %v1554_v60 }
  0xc7   :  { %1314 = vst [vmem:[#allocation8 + $0x8] sm:$0xff] %v1162_v2   ;;  %v1564_v6 = vadd.f32 %v820_v59, %v758_v4  ;;  %v519_v59 = vpop.f32.mrf.mxu3 }
  0xc8   :  { %1322 = vst [vmem:[#allocation8 + $0x48] sm:$0xff] %v1202_v5   ;;  %v1650_v4 = vadd.f32 %v1540_v38, %v519_v59 }
  0xc9   :  { %v481_v26 = vpop.f32.mrf.mxu2 }
  0xca   :  { %v404_v7 = vpop.f32.mrf.mxu0  ;;  %v444_v8 = vpop.f32.mrf.mxu1  ;;  %v1594_v27 = vadd.f32 %v1540_v38, %v481_v26 }
  0xcb   :  { %v1575_v14 = vadd.f32 %v1540_v38, %v444_v8  ;;  %v1578_v17 = vadd.f32 %v1540_v38, %v404_v7 }
  0xcc   :  { %v1242_v28 = vpack.c.bf16 %v1594_v27, %v1591_v25 }
  0xcd   :  { %v686_v51 = vadd.f32 %v1560_v3, %v1578_v17 }
  0xce   :  { %1330 = vst [vmem:[#allocation8 + $0x88] sm:$0xff] %v1242_v28  }
  0xcf   :  { %v521_v7 = vpop.f32.mrf.mxu3 }
  0xd0   :  { %v1656_v10 = vadd.f32 %v1540_v38, %v521_v7 }
  0xd1   :  { %v484_v35 = vpop.f32.mrf.mxu2 }
  0xd2   :  { %v406_v15 = vpop.f32.mrf.mxu0  ;;  %v446_v16 = vpop.f32.mrf.mxu1  ;;  %v1615_v43 = vadd.f32 %v1540_v38, %v484_v35  ;;  %v1282_v13 = vpack.c.bf16 %v1656_v10, %v1650_v4 }
  0xd3   :  { %v1581_v18 = vadd.f32 %v1540_v38, %v406_v15  ;;  %v1584_v19 = vadd.f32 %v1540_v38, %v446_v16 }
  0xd4   :  { %1338 = vst [vmem:[#allocation8 + $0xc8] sm:$0xff] %v1282_v13  }
  0xd5   :  { %v1167_v21 = vpack.c.bf16 %v1581_v18, %v1578_v17  ;;  %v1207_v22 = vpack.c.bf16 %v1584_v19, %v1575_v14 }
  0xd7   :  { %1315 = vst [vmem:[#allocation8 + $0x10] sm:$0xff] %v1167_v21   ;;  %v524_v26 = vpop.f32.mrf.mxu3 }
  0xd8   :  { %1323 = vst [vmem:[#allocation8 + $0x50] sm:$0xff] %v1207_v22  }
  0xd9   :  { %v486_v45 = vpop.f32.mrf.mxu2 }
  0xda   :  { %v409_v23 = vpop.f32.mrf.mxu0  ;;  %v449_v24 = vpop.f32.mrf.mxu1  ;;  %v1621_v48 = vadd.f32 %v1540_v38, %v486_v45  ;;  %v760_v45 = vmul.f32 %v1581_v18, %v1581_v18 }
  0xdb   :  { %v1599_v29 = vadd.f32 %v1540_v38, %v449_v24  ;;  %v1602_v32 = vadd.f32 %v1540_v38, %v409_v23 }
  0xdc   :  { %v1247_v50 = vpack.c.bf16 %v1621_v48, %v1615_v43 }
  0xde   :  { %1331 = vst [vmem:[#allocation8 + $0x90] sm:$0xff] %v1247_v50  }
  0xe1   :  { %v489_v58 = vpop.f32.mrf.mxu2 }
  0xe2   :  { %v411_v30 = vpop.f32.mrf.mxu0  ;;  %v451_v31 = vpop.f32.mrf.mxu1  ;;  %v1647_v2 = vadd.f32 %v1540_v38, %v489_v58 }
  0xe3   :  { %v1605_v33 = vadd.f32 %v1540_v38, %v411_v30  ;;  %v1608_v34 = vadd.f32 %v1540_v38, %v451_v31  ;;  %v759_v31 = vmul.f32 %v1578_v17, %v1578_v17 }
  0xe5   :  { %v1172_v37 = vpack.c.bf16 %v1605_v33, %v1602_v32  ;;  %v1212_v39 = vpack.c.bf16 %v1608_v34, %v1599_v29 }
  0xe7   :  { %1316 = vst [vmem:[#allocation8 + $0x18] sm:$0xff] %v1172_v37  }
  0xe8   :  { %1324 = vst [vmem:[#allocation8 + $0x58] sm:$0xff] %v1212_v39   ;;  %v1681_v39 = vadd.f32 %v1540_v38, %v524_v26 }
  0xe9   :  { %v491_v5 = vpop.f32.mrf.mxu2 }
  0xea   :  { %v414_v40 = vpop.f32.mrf.mxu0  ;;  %v454_v41 = vpop.f32.mrf.mxu1  ;;  %v1653_v8 = vadd.f32 %v1540_v38, %v491_v5 }
  0xeb   :  { %v1631_v52 = vadd.f32 %v1540_v38, %v454_v41  ;;  %v1634_v55 = vadd.f32 %v1540_v38, %v414_v40  ;;  %v526_v41 = vpop.f32.mrf.mxu3 }
  0xec   :  { %v1252_v12 = vpack.c.bf16 %v1653_v8, %v1647_v2  ;;  %v1689_v50 = vadd.f32 %v1540_v38, %v526_v41 }
  0xed   :  { %v763_v7 = vmul.f32 %v1634_v55, %v1634_v55 }
  0xee   :  { %1332 = vst [vmem:[#allocation8 + $0x98] sm:$0xff] %v1252_v12   ;;  %v1287_v59 = vpack.c.bf16 %v1689_v50, %v1681_v39 }
  0xf0   :  { %1339 = vst [vmem:[#allocation8 + $0xd0] sm:$0xff] %v1287_v59  }
  0xf1   :  { %v494_v24 = vpop.f32.mrf.mxu2 }
  0xf2   :  { %v416_v53 = vpop.f32.mrf.mxu0  ;;  %v456_v54 = vpop.f32.mrf.mxu1  ;;  %v1678_v37 = vadd.f32 %v1540_v38, %v494_v24 }
  0xf3   :  { %v1637_v56 = vadd.f32 %v1540_v38, %v416_v53  ;;  %v1640_v57 = vadd.f32 %v1540_v38, %v456_v54  ;;  %v822_v53 = vadd.f32 %v1564_v6, %v759_v31  ;;  %v761_v54 = vmul.f32 %v1602_v32, %v1602_v32 }
  0xf5   :  { %v1177_v61 = vpack.c.bf16 %v1637_v56, %v1634_v55  ;;  %v1217_v62 = vpack.c.bf16 %v1640_v57, %v1631_v52 }
  0xf7   :  { %1317 = vst [vmem:[#allocation8 + $0x20] sm:$0xff] %v1177_v61   ;;  %v687_v61 = vadd.f32 %v686_v51, %v1581_v18 }
  0xf8   :  { %1325 = vst [vmem:[#allocation8 + $0x60] sm:$0xff] %v1217_v62   ;;  %v823_v62 = vadd.f32 %v822_v53, %v760_v45 }
  0xf9   :  { %v496_v40 = vpop.f32.mrf.mxu2  ;;  %v688_v6 = vadd.f32 %v687_v61, %v1602_v32  ;;  %v764_v32 = vmul.f32 %v1637_v56, %v1637_v56 }
  0xfa   :  { %v419_v63 = vpop.f32.mrf.mxu0  ;;  %v459_v1 = vpop.f32.mrf.mxu1  ;;  %v1686_v47 = vadd.f32 %v1540_v38, %v496_v40  ;;  %v824_v17 = vadd.f32 %v823_v62, %v761_v54 }
  0xfb   :  { %v1663_v15 = vadd.f32 %v1540_v38, %v459_v1  ;;  %v420_v21 = vadd.f32 %v1540_v38, %v419_v63  ;;  %v762_v63 = vmul.f32 %v1605_v33, %v1605_v33  ;;  %v689_v24 = vadd.f32 %v688_v6, %v1605_v33 }
  0xfc   :  { %v1257_v58 = vpack.c.bf16 %v1686_v47, %v1678_v37 }
  0xfd   :  { %v825_v26 = vadd.f32 %v824_v17, %v762_v63  ;;  %v690_v31 = vadd.f32 %v689_v24, %v1634_v55 }
  0xfe   :  { %1333 = vst [vmem:[#allocation8 + $0xa0] sm:$0xff] %v1257_v58  }
  0xff   :  { %v691_v40 = vadd.f32 %v690_v31, %v1637_v56 }
 0x101   :  { %v692_v53 = vadd.f32 %v691_v40, %v420_v21 }
 0x102   :  { %v421_v16 = vpop.f32.mrf.mxu0  ;;  %v461_v20 = vpop.f32.mrf.mxu1 }
 0x103   :  { %v1667_v22 = vadd.f32 %v1540_v38, %v421_v16  ;;  %v1670_v23 = vadd.f32 %v1540_v38, %v461_v20  ;;  %v499_v16 = vpop.f32.mrf.mxu2  ;;  %v529_v20 = vpop.f32.mrf.mxu3 }
 0x104   :  { %v1724_v58 = vadd.f32 %v1540_v38, %v499_v16  ;;  %v1727_v59 = vadd.f32 %v1540_v38, %v529_v20 }
 0x105   :  { %v1182_v28 = vpack.c.bf16 %v1667_v22, %v420_v21  ;;  %v1222_v30 = vpack.c.bf16 %v1670_v23, %v1663_v15  ;;  %v766_v33 = vmul.f32 %v1667_v22, %v1667_v22 }
 0x107   :  { %1318 = vst [vmem:[#allocation8 + $0x28] sm:$0xff] %v1182_v28  }
 0x108   :  { %1326 = vst [vmem:[#allocation8 + $0x68] sm:$0xff] %v1222_v30  }
 0x10a   :  { %v424_v35 = vpop.f32.mrf.mxu0  ;;  %v464_v36 = vpop.f32.mrf.mxu1 }
 0x10b   :  { %v1704_v3 = vadd.f32 %v1540_v38, %v464_v36  ;;  %v425_v12 = vadd.f32 %v1540_v38, %v424_v35  ;;  %v826_v35 = vadd.f32 %v825_v26, %v763_v7  ;;  %v765_v36 = vmul.f32 %v420_v21, %v420_v21  ;;  %v501_v55 = vpop.f32.mrf.mxu2  ;;  %v531_v61 = vpop.f32.mrf.mxu3 }
 0x10c   :  { %v1731_v56 = vadd.f32 %v1540_v38, %v501_v55  ;;  %v1734_v6 = vadd.f32 %v1540_v38, %v531_v61  ;;  %v693_v21 = vadd.f32 %v692_v53, %v1667_v22  ;;  %v772_v61 = vmul.f32 %v1548_v46, %v1548_v46 }
 0x10d   :  { %v827_v41 = vadd.f32 %v826_v35, %v764_v32  ;;  %v767_v62 = vmul.f32 %v425_v12, %v425_v12 }
 0x10e   :  { %v1292_v7 = vpack.c.bf16 %v1734_v6, %v1727_v59  ;;  %v694_v16 = vadd.f32 %v693_v21, %v425_v12 }
 0x10f   :  { %v828_v54 = vadd.f32 %v827_v41, %v765_v36 }
 0x110   :  { %1340 = vst [vmem:[#allocation8 + $0xd8] sm:$0xff] %v1292_v7  }
 0x111   :  { %v829_v17 = vadd.f32 %v828_v54, %v766_v33 }
 0x112   :  { %v426_v1 = vpop.f32.mrf.mxu0  ;;  %v466_v5 = vpop.f32.mrf.mxu1 }
 0x113   :  { %v427_v18 = vadd.f32 %v1540_v38, %v426_v1  ;;  %v1712_v13 = vadd.f32 %v1540_v38, %v466_v5  ;;  %v1262_v5 = vpack.c.bf16 %v1731_v56, %v1724_v58  ;;  %v830_v20 = vadd.f32 %v829_v17, %v767_v62  ;;  %v504_v40 = vpop.f32.mrf.mxu2  ;;  %v534_v41 = vpop.f32.mrf.mxu3 }
 0x114   :  { %v1763_v7 = vadd.f32 %v1540_v38, %v534_v41 }
 0x115   :  { %v1187_v28 = vpack.c.bf16 %v427_v18, %v425_v12  ;;  %v1227_v30 = vpack.c.bf16 %v1712_v13, %v1704_v3  ;;  %v768_v1 = vmul.f32 %v427_v18, %v427_v18  ;;  %1334 = vst [vmem:[#allocation8 + $0xa8] sm:$0xff] %v1262_v5   ;;  %v695_v26 = vadd.f32 %v694_v16, %v427_v18 }
 0x116   :  { %v1760_v5 = vadd.f32 %v1540_v38, %v504_v40  ;;  %v776_v40 = vmul.f32 %v1584_v19, %v1584_v19 }
 0x117   :  { %1319 = vst [vmem:[#allocation8 + $0x30] sm:$0xff] %v1187_v28   ;;  %v831_v28 = vadd.f32 %v830_v20, %v768_v1 }
 0x118   :  { %1327 = vst [vmem:[#allocation8 + $0x70] sm:$0xff] %v1227_v30  }
 0x11a   :  { %v429_v45 = vpop.f32.mrf.mxu0  ;;  %v469_v51 = vpop.f32.mrf.mxu1 }
 0x11b   :  { %v430_v63 = vadd.f32 %v1540_v38, %v429_v45  ;;  %v1742_v32 = vadd.f32 %v1540_v38, %v469_v51  ;;  %v771_v51 = vmul.f32 %v1544_v42, %v1544_v42  ;;  %v536_v16 = vpop.f32.mrf.mxu3 }
 0x11d   :  { %v769_v24 = vmul.f32 %v430_v63, %v430_v63  ;;  %v696_v31 = vadd.f32 %v695_v26, %v430_v63 }
 0x11f   :  { %v832_v12 = vadd.f32 %v831_v28, %v769_v24  ;;  %v774_v24 = vmul.f32 %v1558_v0, %v1558_v0 }
 0x122   :  { %v431_v30 = vpop.f32.mrf.mxu0  ;;  %v471_v22 = vpop.f32.mrf.mxu1 }
 0x123   :  { %v432_v35 = vadd.f32 %v1540_v38, %v431_v30  ;;  %v1746_v36 = vadd.f32 %v1540_v38, %v471_v22  ;;  %v775_v22 = vmul.f32 %v1575_v14, %v1575_v14 }
 0x125   :  { %v1192_v33 = vpack.c.bf16 %v432_v35, %v430_v63  ;;  %v697_v45 = vadd.f32 %v696_v31, %v432_v35  ;;  %v770_v53 = vmul.f32 %v432_v35, %v432_v35  ;;  %v1232_v18 = vpack.c.bf16 %v1746_v36, %v1742_v32 }
 0x126   :  { %v773_v63 = vmul.f32 %v1554_v60, %v1554_v60 }
 0x127   :  { %1320 = vst [vmem:[#allocation8 + $0x38] sm:$0xff] %v1192_v33   ;;  %v698_v54 = vadd.f32 %v697_v45, %v1544_v42  ;;  %v833_v55 = vadd.f32 %v832_v12, %v770_v53  ;;  %v506_v42 = vpop.f32.mrf.mxu2  ;;  %v777_v12 = vmul.f32 %v1599_v29, %v1599_v29 }
 0x128   :  { %1328 = vst [vmem:[#allocation8 + $0x78] sm:$0xff] %v1232_v18   ;;  %v1766_v20 = vadd.f32 %v1540_v38, %v506_v42  ;;  %v539_v18 = vpop.f32.mrf.mxu3 }
 0x129   :  { %v699_v62 = vadd.f32 %v698_v54, %v1548_v46  ;;  %v834_v21 = vadd.f32 %v833_v55, %v771_v51  ;;  %v1769_v46 = vadd.f32 %v1540_v38, %v536_v16  ;;  %v779_v55 = vmul.f32 %v1631_v52, %v1631_v52 }
 0x12a   :  { %v1267_v28 = vpack.c.bf16 %v1766_v20, %v1760_v5  ;;  %v1803_v42 = vadd.f32 %v1540_v38, %v539_v18 }
 0x12b   :  { %v700_v17 = vadd.f32 %v699_v62, %v1554_v60  ;;  %v835_v1 = vadd.f32 %v834_v21, %v772_v61  ;;  %v1297_v30 = vpack.c.bf16 %v1769_v46, %v1763_v7  ;;  %v780_v62 = vmul.f32 %v1640_v57, %v1640_v57 }
 0x12c   :  { %1335 = vst [vmem:[#allocation8 + $0xb0] sm:$0xff] %v1267_v28  }
 0x12d   :  { %v701_v60 = vadd.f32 %v700_v17, %v1558_v0  ;;  %v836_v26 = vadd.f32 %v835_v1, %v773_v63  ;;  %1341 = vst [vmem:[#allocation8 + $0xe0] sm:$0xff] %v1297_v30   ;;  %v781_v63 = vmul.f32 %v1663_v15, %v1663_v15 }
 0x12f   :  { %v702_v31 = vadd.f32 %v701_v60, %v1575_v14  ;;  %v837_v35 = vadd.f32 %v836_v26, %v774_v24  ;;  %v509_v53 = vpop.f32.mrf.mxu2  ;;  %v778_v14 = vmul.f32 %v1608_v34, %v1608_v34  ;;  %v782_v60 = vmul.f32 %v1670_v23, %v1670_v23 }
 0x130   :  { %v541_v16 = vpop.f32.mrf.mxu3 }
 0x131   :  { %v703_v41 = vadd.f32 %v702_v31, %v1584_v19  ;;  %v838_v0 = vadd.f32 %v837_v35, %v775_v22  ;;  %v783_v31 = vmul.f32 %v1704_v3, %v1704_v3 }
 0x133   :  { %v839_v33 = vadd.f32 %v838_v0, %v776_v40  ;;  %v704_v45 = vadd.f32 %v703_v41, %v1599_v29 }
 0x135   :  { %v705_v51 = vadd.f32 %v704_v45, %v1608_v34  ;;  %v840_v54 = vadd.f32 %v839_v33, %v777_v12  ;;  %v1800_v34 = vadd.f32 %v1540_v38, %v509_v53  ;;  %v785_v33 = vmul.f32 %v1742_v32, %v1742_v32 }
 0x137   :  { %v706_v19 = vadd.f32 %v705_v51, %v1631_v52  ;;  %v841_v61 = vadd.f32 %v840_v54, %v778_v14  ;;  %v511_v52 = vpop.f32.mrf.mxu2  ;;  %v787_v14 = vmul.f32 %v1567_v9, %v1567_v9  ;;  %v788_v54 = vmul.f32 %v1570_v11, %v1570_v11 }
 0x138   :  { %v1806_v24 = vadd.f32 %v1540_v38, %v511_v52  ;;  %v544_v45 = vpop.f32.mrf.mxu3 }
 0x139   :  { %v707_v21 = vadd.f32 %v706_v19, %v1640_v57  ;;  %v842_v29 = vadd.f32 %v841_v61, %v779_v55  ;;  %v1809_v57 = vadd.f32 %v1540_v38, %v541_v16  ;;  %v792_v16 = vmul.f32 %v1621_v48, %v1621_v48 }
 0x13a   :  { %v1272_v28 = vpack.c.bf16 %v1806_v24, %v1800_v34 }
 0x13b   :  { %v708_v17 = vadd.f32 %v707_v21, %v1663_v15  ;;  %v843_v1 = vadd.f32 %v842_v29, %v780_v62  ;;  %v1302_v30 = vpack.c.bf16 %v1809_v57, %v1803_v42 }
 0x13c   :  { %1336 = vst [vmem:[#allocation8 + $0xb8] sm:$0xff] %v1272_v28  }
 0x13d   :  { %v709_v15 = vadd.f32 %v708_v17, %v1670_v23  ;;  %v844_v26 = vadd.f32 %v843_v1, %v781_v63  ;;  %v784_v23 = vmul.f32 %v1712_v13, %v1712_v13  ;;  %1342 = vst [vmem:[#allocation8 + $0xe8] sm:$0xff] %v1302_v30  }
 0x13f   :  { %v710_v22 = vadd.f32 %v709_v15, %v1704_v3  ;;  %v845_v35 = vadd.f32 %v844_v26, %v782_v60  ;;  %v786_v3 = vmul.f32 %v1746_v36, %v1746_v36 }
 0x140   :  { %v546_v21 = vpop.f32.mrf.mxu3 }
 0x141   :  { %v846_v40 = vadd.f32 %v845_v35, %v783_v31  ;;  %v711_v41 = vadd.f32 %v710_v22, %v1712_v13  ;;  %v1843_v29 = vadd.f32 %v1540_v38, %v546_v21  ;;  %v794_v22 = vmul.f32 %v1653_v8, %v1653_v8 }
 0x142   :  { %v795_v35 = vmul.f32 %v1678_v37, %v1678_v37 }
 0x143   :  { %v847_v0 = vadd.f32 %v846_v40, %v784_v23  ;;  %v712_v12 = vadd.f32 %v711_v41, %v1742_v32  ;;  %v789_v32 = vmul.f32 %v1591_v25, %v1591_v25 }
 0x145   :  { %v848_v53 = vadd.f32 %v847_v0, %v785_v33  ;;  %v713_v18 = vadd.f32 %v712_v12, %v1746_v36  ;;  %v1840_v36 = vadd.f32 %v1540_v38, %v544_v45  ;;  %v797_v0 = vmul.f32 %v1724_v58, %v1724_v58 }
 0x147   :  { %v714_v51 = vadd.f32 %v713_v18, %v1567_v9  ;;  %v849_v13 = vadd.f32 %v848_v53, %v786_v3  ;;  %v790_v9 = vmul.f32 %v1594_v27, %v1594_v27  ;;  %v1307_v17 = vpack.c.bf16 %v1843_v29, %v1840_v36 }
 0x148   :  { %v549_v30 = vpop.f32.mrf.mxu3  ;;  %v798_v53 = vmul.f32 %v1731_v56, %v1731_v56 }
 0x149   :  { %v715_v55 = vadd.f32 %v714_v51, %v1570_v11  ;;  %v850_v19 = vadd.f32 %v849_v13, %v787_v14  ;;  %1343 = vst [vmem:[#allocation8 + $0xf0] sm:$0xff] %v1307_v17   ;;  %v799_v51 = vmul.f32 %v1760_v5, %v1760_v5  ;;  %v805_v17 = vmul.f32 %v1650_v4, %v1650_v4 }
 0x14b   :  { %v716_v61 = vadd.f32 %v715_v55, %v1591_v25  ;;  %v851_v62 = vadd.f32 %v850_v19, %v788_v54  ;;  %v791_v25 = vmul.f32 %v1615_v43, %v1615_v43  ;;  %v800_v54 = vmul.f32 %v1766_v20, %v1766_v20 }
 0x14c   :  { %v801_v19 = vmul.f32 %v1800_v34, %v1800_v34 }
 0x14d   :  { %v717_v63 = vadd.f32 %v716_v61, %v1594_v27  ;;  %v852_v11 = vadd.f32 %v851_v62, %v789_v32  ;;  %v793_v27 = vmul.f32 %v1647_v2, %v1647_v2  ;;  %v802_v61 = vmul.f32 %v1806_v24, %v1806_v24 }
 0x14e   :  { %v1488_v62 = vmov 0.0  }
 0x14f   :  { %v718_v1 = vadd.f32 %v717_v63, %v1615_v43  ;;  %v853_v52 = vadd.f32 %v852_v11, %v790_v9  ;;  %60 = vst [vmem:[#allocation2] sm:$0x3] %v1488_v62  ;;  %v804_v63 = vmul.f32 %v1624_v49, %v1624_v49 }
 0x150   :  { %v551_v45 = vpop.f32.mrf.mxu3 }
 0x151   :  { %v854_v60 = vadd.f32 %v853_v52, %v791_v25  ;;  %v719_v15 = vadd.f32 %v718_v1, %v1621_v48  ;;  %v796_v48 = vmul.f32 %v1686_v47, %v1686_v47  ;;  %v806_v1 = vmul.f32 %v1656_v10, %v1656_v10 }
 0x153   :  { %v720_v26 = vadd.f32 %v719_v15, %v1647_v2  ;;  %v855_v28 = vadd.f32 %v854_v60, %v792_v16 }
 0x155   :  { %v721_v43 = vadd.f32 %v720_v26, %v1653_v8  ;;  %v856_v31 = vadd.f32 %v855_v28, %v793_v27  ;;  %v1872_v8 = vadd.f32 %v1540_v38, %v549_v30 }
 0x157   :  { %v722_v40 = vadd.f32 %v721_v43, %v1678_v37  ;;  %v857_v41 = vadd.f32 %v856_v31, %v794_v22  ;;  %v1878_v37 = vadd.f32 %v1540_v38, %v551_v45 }
 0x159   :  { %v723_v23 = vadd.f32 %v722_v40, %v1686_v47  ;;  %v858_v2 = vadd.f32 %v857_v41, %v795_v35  ;;  %v1312_v18 = vpack.c.bf16 %v1878_v37, %v1872_v8 }
 0x15b   :  { %v724_v12 = vadd.f32 %v723_v23, %v1724_v58  ;;  %v859_v33 = vadd.f32 %v858_v2, %v796_v48  ;;  %1344 = vst [vmem:[#allocation8 + $0xf8] sm:$0xff] %v1312_v18   ;;  %v814_v2 = vmul.f32 %v1809_v57, %v1809_v57 }
 0x15c   :  { %930 = dma.vmem_to_hbm [thread:$0]  %s923_s9, 4096, %s925_s12, [#allocation5], %s1484_s29, %s1484_s29, %s1485_s30  }
 0x15d   :  { %v725_v47 = vadd.f32 %v724_v12, %v1731_v56  ;;  %v860_v58 = vadd.f32 %v859_v33, %v797_v0  ;;  %v815_v33 = vmul.f32 %v1840_v36, %v1840_v36 }
 0x15f   :  { %v861_v3 = vadd.f32 %v860_v58, %v798_v53  ;;  %v726_v14 = vadd.f32 %v725_v47, %v1760_v5  ;;  %v816_v47 = vmul.f32 %v1843_v29, %v1843_v29  ;;  %v817_v58 = vmul.f32 %v1872_v8, %v1872_v8 }
 0x161   :  { %v862_v38 = vadd.f32 %v861_v3, %v799_v51  ;;  %v727_v13 = vadd.f32 %v726_v14, %v1766_v20  ;;  %v803_v20 = vmul.f32 %v1618_v44, %v1618_v44  ;;  %v818_v3 = vmul.f32 %v1878_v37, %v1878_v37 }
 0x163   :  { %v863_v56 = vadd.f32 %v862_v38, %v800_v54  ;;  %v728_v55 = vadd.f32 %v727_v13, %v1800_v34 }
 0x165   :  { %v864_v32 = vadd.f32 %v863_v56, %v801_v19  ;;  %v729_v5 = vadd.f32 %v728_v55, %v1806_v24 }
 0x167   :  { %v730_v21 = vadd.f32 %v729_v5, %v1618_v44  ;;  %v865_v9 = vadd.f32 %v864_v32, %v802_v61  ;;  %v807_v44 = vmul.f32 %v1681_v39, %v1681_v39  ;;  %v682_v32 = vld [vmem:[#allocation2] sm:$0x1] }
 0x169   :  { %v731_v11 = vadd.f32 %v730_v21, %v1624_v49  ;;  %v866_v34 = vadd.f32 %v865_v9, %v803_v20  ;;  %v808_v49 = vmul.f32 %v1689_v50, %v1689_v50 }
 0x16b   :  { %v732_v25 = vadd.f32 %v731_v11, %v1650_v4  ;;  %v867_v24 = vadd.f32 %v866_v34, %v804_v63  ;;  %v809_v4 = vmul.f32 %v1727_v59, %v1727_v59 }
 0x16d   :  { %v733_v52 = vadd.f32 %v732_v25, %v1656_v10  ;;  %v868_v16 = vadd.f32 %v867_v24, %v805_v17  ;;  %v810_v10 = vmul.f32 %v1734_v6, %v1734_v6 }
 0x16f   :  { %v734_v60 = vadd.f32 %v733_v52, %v1681_v39  ;;  %v869_v15 = vadd.f32 %v868_v16, %v806_v1  ;;  %v811_v39 = vmul.f32 %v1763_v7, %v1763_v7 }
 0x171   :  { %v870_v27 = vadd.f32 %v869_v15, %v807_v44  ;;  %v735_v26 = vadd.f32 %v734_v60, %v1689_v50  ;;  %v812_v50 = vmul.f32 %v1769_v46, %v1769_v46  ;;  %v900_v15 = vld [vmem:[%s1960_s3] sm:$0x1] }
 0x173   :  { %v736_v28 = vadd.f32 %v735_v26, %v1727_v59  ;;  %v871_v30 = vadd.f32 %v870_v27, %v808_v49  ;;  %v813_v59 = vmul.f32 %v1803_v42, %v1803_v42 }
 0x175   :  { %v737_v22 = vadd.f32 %v736_v28, %v1734_v6  ;;  %v872_v43 = vadd.f32 %v871_v30, %v809_v4  ;;  %v913_v4 = vld [vmem:[%s1961_s4] sm:$0x1] }
 0x177   :  { %v738_v31 = vadd.f32 %v737_v22, %v1763_v7  ;;  %v873_v35 = vadd.f32 %v872_v43, %v810_v10 }
 0x179   :  { %v739_v40 = vadd.f32 %v738_v31, %v1769_v46  ;;  %v874_v41 = vadd.f32 %v873_v35, %v811_v39 }
 0x17b   :  { %v740_v48 = vadd.f32 %v739_v40, %v1803_v42  ;;  %v875_v23 = vadd.f32 %v874_v41, %v812_v50 }
 0x17d   :  { %v741_v6 = vadd.f32 %v740_v48, %v1809_v57  ;;  %v876_v0 = vadd.f32 %v875_v23, %v813_v59 }
 0x17f   :  { %v877_v7 = vadd.f32 %v876_v0, %v814_v2  ;;  %v742_v12 = vadd.f32 %v741_v6, %v1840_v36 }
 0x181   :  { %v878_v46 = vadd.f32 %v877_v7, %v815_v33  ;;  %v743_v45 = vadd.f32 %v742_v12, %v1843_v29 }
 0x183   :  { %v879_v42 = vadd.f32 %v878_v46, %v816_v47  ;;  %v744_v53 = vadd.f32 %v743_v45, %v1872_v8  ;;  %v754_v8 = vld [vmem:[#allocation2 + $0x1] sm:$0x1] }
 0x185   :  { %v880_v57 = vadd.f32 %v879_v42, %v817_v58  ;;  %v745_v18 = vadd.f32 %v744_v53, %v1878_v37 }
 0x187   :  { %v746_v14 = vrot.slane %v745_v18, 4  ;;  %v881_v36 = vadd.f32 %v880_v57, %v818_v3 }
 0x189   :  { %v747_v51 = vadd.f32 %v746_v14, %v745_v18  ;;  %v882_v38 = vrot.slane %v881_v36, 4 }
 0x18b   :  { %v748_v13 = vrot.slane %v747_v51, 2  ;;  %v883_v54 = vadd.f32 %v882_v38, %v881_v36 }
 0x18d   :  { %v749_v56 = vadd.f32 %v748_v13, %v747_v51  ;;  %v884_v29 = vrot.slane %v883_v54, 2 }
 0x18f   :  { %v750_v55 = vrot.slane %v749_v56, 1  ;;  %v885_v19 = vadd.f32 %v884_v29, %v883_v54 }
 0x191   :  { %v751_v5 = vadd.f32 %v750_v55, %v749_v56  ;;  %v886_v61 = vrot.slane %v885_v19, 1 }
 0x193   :  { %v752_v62 = vadd.f32 %v751_v5, %v682_v32  ;;  %v887_v20 = vadd.f32 %v886_v61, %v885_v19 }
 0x195   :  { %753 = vst [vmem:[#allocation2] sm:$0x1] %v752_v62  ;;  %v888_v21 = vadd.f32 %v887_v20, %v754_v8 }
 0x197   :  { %889 = vst [vmem:[#allocation2 + $0x1] sm:$0x1] %v888_v21 }
 0x19c   :  { %v893_v37 = vld [vmem:[#allocation2] sm:$0x1] }
 0x19d   :  { %v894_v9 = vmul.f32 0.001953125, %v893_v37 }
 0x19e   :  { %v895_v63 = vld [vmem:[#allocation2 + $0x1] sm:$0x1] }
 0x19f   :  { %v896_v11 = vmul.f32 0.001953125, %v895_v63  ;;  %v897_v34 = vmul.f32 %v894_v9, %v894_v9 }
 0x1a1   :  { %v898_v17 = vsub.f32 %v896_v11, %v897_v34 }
 0x1a3   :  { %v899_v25 = vmax.f32 %v898_v17, 0.0 }
 0x1a5   :  { %v901_v24 = vadd.f32 1e-05, %v899_v25 }
 0x1a7   :  { %1377 = vrsqrt.f32 %v901_v24  ;;  %vm908_vm1 = vweird.f32 %v901_v24 }
 0x1ad   :  { %v1378_v1 = vpop.eup %1377 }
 0x1ae   :  { %v903_v52 = vmul.f32 %v1378_v1, %v901_v24  ;;  %vm909_vm0 = vweird.f32 %v1378_v1 }
 0x1af   :  { %vm910_vm2 = vmor %vm908_vm1, %vm909_vm0 }
 0x1b0   :  { %v904_v16 = vmul.f32 %v1378_v1, %v903_v52 }
 0x1b2   :  { %v905_v44 = vmul.f32 0.5, %v904_v16 }
 0x1b4   :  { %v906_v60 = vsub.f32 1.5, %v905_v44 }
 0x1b6   :  { %v907_v49 = vmul.f32 %v1378_v1, %v906_v60 }
 0x1b8   :  { %v911_v27 = vsel %vm910_vm2, %v1378_v1, %v907_v49 }
 0x1b9   :  { %v912_v26 = vmul.f32 %v911_v27, %v900_v15 }
 0x1bb   :  { %v914_v28 = vmul.f32 %v912_v26, %v894_v9  ;;  %916 = vst [vmem:[#allocation9] sm:$0x1] %v912_v26 }
 0x1bd   :  { %v915_v30 = vsub.f32 %v913_v4, %v914_v28 }
 0x1bf   :  { %917 = vst [vmem:[#allocation9 + $0x1] sm:$0x1] %v915_v30 }
 0x1c0   :  { %941 = dma.vmem_to_hbm [thread:$0]  %s937_s17, 32, %s939_s20, [#allocation10]  }
 0x1c1   :  { %1479 = dma.done.wait [#allocation5], 4096  }
 0x1c2   :  { %1480 = vsyncadd [#allocation5], 4294963200 }
 0x1c3   :  { %1481 = dma.done.wait [#allocation10], 32  }
 0x1c4   :  { %1482 = vsyncadd [#allocation10], 4294967264 }
 0x1c5   :  { %950 = vsyncpa [#allocation4], 1 }
 0x1c6   :  { %951 = vsyncpa [#allocation7], 1 }
 0x1c7   :  { %952 = vsyncpa [#allocation5], 1 }
 0x1c8   :  { %953 = vsyncpa [#allocation10], 1 }

</bundles_post_ra>
